<compile_context>
chip_gen: v7x
topology: tpu7x:2x2x1
jax: 0.10.0
libtpu: 0.0.40
codegen_flags: <defaults>
</compile_context>

<pallas_src>
import functools

import jax
import jax.numpy as jnp
from jax import lax
from jax.experimental import pallas as pl
from jax.experimental.pallas import tpu as pltpu


def _vmem():
    return pl.BlockSpec(memory_space=pltpu.MemorySpace.VMEM)


def _round_up(n, m):
    return ((n + m - 1) // m) * m


# ----------------------------------------------------------------------------
# Single fused kernel for the entire forward pass.
# ----------------------------------------------------------------------------
def _fused_kernel(B, E, V, ED, H, OUT_W, damping, apply_norm, eps,
                  data_ref, p_ref, out_ref):
    VE = V + ED

    # ---- unpack the two slabs (static slices) -------------------------------
    xcat = data_ref[0:B + E, 0:VE]            # (B+E, VE): [[x, 0], [0, ew]]
    src_f = data_ref[B + E:B + E + 1, 0:E]    # (1, E): edge source ids as f32

    w0c = p_ref[0:H, 0:VE]                    # (H, VE)    = [layer0.W | w_0.W]
    w1c = p_ref[H:H + OUT_W, 0:H]             # (OUT_W, H) = [layer1.W ; w_1.W ; 0]
    rb = H + OUT_W
    l0b = p_ref[rb + 0:rb + 1, 0:H]           # (1, H)
    w0b = p_ref[rb + 1:rb + 2, 0:H]
    gamma = p_ref[rb + 2:rb + 3, 0:H]
    beta = p_ref[rb + 3:rb + 4, 0:H]
    b1 = p_ref[rb + 4:rb + 5, 0:OUT_W]        # (1, OUT_W) = [layer1.b | w_1.b | 0]

    # ---- fused front linears: layer0(x) and w_0(edge_weight), one MXU push --
    # PyTorch (out, in) weight layout consumed as-is: contract dim 1 of both.
    front = lax.dot_general(xcat, w0c, (((1,), (1,)), ((), ())),
                            preferred_element_type=jnp.float32)   # (B+E, H)
    out = front[0:B, :] + l0b                 # (B, H)
    w = front[B:B + E, :] + w0b               # (E, H)

    # ---- edge interaction loop, vectorized as segment matmuls ---------------
    # Each edge has exactly one source, so the per-i masks are disjoint and
    # the sequential PyTorch loop is exactly:
    #   out[i] += damping * sum_{e: src(e)==i} w[e]
    #   w[e]   += damping * sum_j out_new[src(e), j]
    # damping is folded into the one-hot M (no separate scalar multiplies).
    src_i = src_f.astype(jnp.int32)           # (1, E), exact small ints
    M = jnp.where(lax.broadcasted_iota(jnp.int32, (B, E), 0) == src_i,
                  jnp.float32(damping), jnp.float32(0.0))          # (B, E)
    out = out + jnp.dot(M, w, preferred_element_type=jnp.float32)  # (B, H)
    s = jnp.broadcast_to(jnp.sum(out, axis=1, keepdims=True), (B, H))
    # w += damping * one_hot^T @ s  ==  M^T @ s via transposed-LHS contraction
    w = w + lax.dot_general(M, s, (((0,), (0,)), ((), ())),
                            preferred_element_type=jnp.float32)    # (E, H)

    # ---- cauchy selector (cosine sim - I), row softmax, mixing --------------
    # NOTE: like the reference, an all-zero `out` row yields inf/nan (no eps);
    # semantics preserved deliberately.
    inv = lax.rsqrt(jnp.sum(out * out, axis=1, keepdims=True))     # (B, 1)
    xn = out * inv                                                 # row-normalized
    sim = lax.dot_general(xn, xn, (((1,), (1,)), ((), ())),
                          preferred_element_type=jnp.float32)      # (B, B)
    r = lax.broadcasted_iota(jnp.int32, (B, B), 0)
    c = lax.broadcasted_iota(jnp.int32, (B, B), 1)
    sim = sim - (r == c).astype(jnp.float32)                       # subtract eye
    # sim is bounded in [-1, 1], so exp() is safe without max-subtraction.
    e = jnp.exp(sim)
    p = e * pl.reciprocal(jnp.sum(e, axis=1, keepdims=True), approx=False)
    out = jnp.dot(p, out, preferred_element_type=jnp.float32)      # (B, H)

    # ---- BatchNorm1d, training mode (batch stats, biased variance) ----------
    if apply_norm:  # static: mirrors `if w.size(0) > 1`
        mean = jnp.mean(w, axis=0, keepdims=True)
        var = jnp.mean((w - mean) ** 2, axis=0, keepdims=True)
        w = (w - mean) * lax.rsqrt(var + eps) * gamma + beta

    # ---- fused back linears: layer1(out) and w_1(w), one MXU push -----------
    z = jnp.concatenate([out, w], axis=0)                          # (B+E, H)
    res = lax.dot_general(z, w1c, (((1,), (1,)), ((), ())),
                          preferred_element_type=jnp.float32)      # (B+E, OUT_W)
    out_ref[...] = res + b1   # off-diagonal blocks are discarded by the wrapper


# ----------------------------------------------------------------------------
# Parameter packing: build the lane-dense parameter slab ONCE.
# ----------------------------------------------------------------------------
def pack_params(params, vertex_dim, edge_dim, hid_dim):
    V, ED, H = vertex_dim, edge_dim, hid_dim
    VE = V + ED
    OUT_W = _round_up(VE, 128)                # lane-dense output width
    PW = max(H, OUT_W)
    slab = jnp.zeros((H + OUT_W + 5, PW), jnp.float32)
    # Front weights [layer0.W | w_0.W]  (PyTorch (out, in) layout).
    slab = slab.at[0:H, 0:V].set(params["l0_w"].astype(jnp.float32))
    slab = slab.at[0:H, V:VE].set(params["w0_w"].astype(jnp.float32))
    # Back weights [layer1.W ; w_1.W], zero-padded to OUT_W rows.
    slab = slab.at[H:H + V, 0:H].set(params["l1_w"].astype(jnp.float32))
    slab = slab.at[H + V:H + VE, 0:H].set(params["w1_w"].astype(jnp.float32))
    rb = H + OUT_W
    slab = slab.at[rb + 0, 0:H].set(params["l0_b"].astype(jnp.float32))
    slab = slab.at[rb + 1, 0:H].set(params["w0_b"].astype(jnp.float32))
    slab = slab.at[rb + 2, 0:H].set(params["gamma"].astype(jnp.float32))
    slab = slab.at[rb + 3, 0:H].set(params["beta"].astype(jnp.float32))
    slab = slab.at[rb + 4, 0:V].set(params["l1_b"].astype(jnp.float32))
    slab = slab.at[rb + 4, V:VE].set(params["w1_b"].astype(jnp.float32))
    return slab


# ----------------------------------------------------------------------------
# Wrapper: one pallas_call (2 input DMAs, 1 output DMA) for the whole forward.
# ----------------------------------------------------------------------------
def intersection_forward(x, edge_index, edge_weight, param_slab, damping=0.45):
    B, V = x.shape
    E, ED = edge_weight.shape
    VE = V + ED
    OUT_W = _round_up(VE, 128)
    H = param_slab.shape[0] - OUT_W - 5       # layout defined in pack_params
    apply_norm = E > 1                         # static, mirrors `if w.size(0) > 1`

    # Per-call data slab: block-diag [x | edge_weight] plus a trailing row
    # holding the edge source indices (exact small integers stored as f32).
    W_in = max(VE, E)
    data = jnp.zeros((B + E + 1, W_in), jnp.float32)
    data = data.at[0:B, 0:V].set(x.astype(jnp.float32))
    data = data.at[B:B + E, V:VE].set(edge_weight.astype(jnp.float32))
    data = data.at[B + E, 0:E].set(edge_index[0].astype(jnp.float32))

    kernel = functools.partial(_fused_kernel, B, E, V, ED, H, OUT_W,
                               float(damping), apply_norm, 1e-5)
    slab = pl.pallas_call(
        kernel,
        out_shape=jax.ShapeDtypeStruct((B + E, OUT_W), jnp.float32),
        in_specs=[_vmem(), _vmem()],
        out_specs=_vmem(),
    )(data, param_slab)
    # Slice the two diagonal blocks of the fused output slab.
    return slab[:B, :V], slab[B:, V:VE]


# ----------------------------------------------------------------------------
# Pure-JAX reference mirroring the PyTorch loop semantics (for verification)
# ----------------------------------------------------------------------------
def reference_forward(x, edge_index, edge_weight, params, damping=0.45):
    out = x @ params["l0_w"].T + params["l0_b"]
    w = edge_weight @ params["w0_w"].T + params["w0_b"]
    B = x.shape[0]
    for i in range(B):
        mask = edge_index[0] == i
        if not bool(jnp.any(mask)):
            continue
        out = out.at[i].add(damping * jnp.sum(jnp.where(mask[:, None], w, 0.0), axis=0))
        w = jnp.where(mask[:, None], w + damping * jnp.sum(out[i]), w)
    base = jnp.sqrt(jnp.sum(out ** 2, axis=1, keepdims=True))
    sim = (out @ out.T) / (base @ base.T) - jnp.eye(B)
    p = jax.nn.softmax(sim, axis=1)
    out = p @ out
    if w.shape[0] > 1:
        mean = w.mean(0)
        var = ((w - mean) ** 2).mean(0)
        w = (w - mean) / jnp.sqrt(var + 1e-5) * params["gamma"] + params["beta"]
    return out @ params["l1_w"].T + params["l1_b"], w @ params["w1_w"].T + params["w1_b"]


if __name__ == "__main__":
    # Shapes consistent with the module's forward:
    #   x:           (batch_size, vertex_dim)
    #   edge_index:  (2, E) int32 (row 0 = source vertex of each edge)
    #   edge_weight: (E, edge_dim)
    B, V, ED, H, E = 8, 16, 8, 32, 12

    key = jax.random.PRNGKey(0)
    ks = jax.random.split(key, 12)

    params = {
        "l0_w": jax.random.normal(ks[0], (H, V), jnp.float32) * 0.1,
        "l0_b": jax.random.normal(ks[1], (H,), jnp.float32) * 0.1,
        "w0_w": jax.random.normal(ks[2], (H, ED), jnp.float32) * 0.1,
        "w0_b": jax.random.normal(ks[3], (H,), jnp.float32) * 0.1,
        "l1_w": jax.random.normal(ks[4], (V, H), jnp.float32) * 0.1,
        "l1_b": jax.random.normal(ks[5], (V,), jnp.float32) * 0.1,
        "w1_w": jax.random.normal(ks[6], (ED, H), jnp.float32) * 0.1,
        "w1_b": jax.random.normal(ks[7], (ED,), jnp.float32) * 0.1,
        "gamma": jnp.ones((H,), jnp.float32),   # BatchNorm1d affine init
        "beta": jnp.zeros((H,), jnp.float32),
    }

    x = jax.random.normal(ks[8], (B, V), jnp.float32)
    edge_weight = jax.random.normal(ks[9], (E, ED), jnp.float32)
    src = jax.random.randint(ks[10], (E,), 0, B, jnp.int32)
    dst = jax.random.randint(ks[11], (E,), 0, B, jnp.int32)
    edge_index = jnp.stack([src, dst], axis=0)

    param_slab = pack_params(params, V, ED, H)   # built once

    out_v, out_e = intersection_forward(x, edge_index, edge_weight, param_slab)
    out_v = jax.block_until_ready(out_v)
    out_e = jax.block_until_ready(out_e)

    ref_v, ref_e = reference_forward(x, edge_index, edge_weight, params)
    assert out_v.shape == (B, V) and out_e.shape == (E, ED)
    assert jnp.allclose(out_v, ref_v, atol=2e-3, rtol=2e-3)
    assert jnp.allclose(out_e, ref_e, atol=2e-3, rtol=2e-3)

    print("KERNEL_OK")
</pallas_src>

<mosaic_0001>
module attributes {stable_mosaic.version = 11 : i64} {
  func.func @_fused_kernel(%arg0: memref<21x24xf32, #tpu.memory_space<vmem>>, %arg1: memref<165x128xf32, #tpu.memory_space<vmem>>, %arg2: memref<20x128xf32, #tpu.memory_space<vmem>>) attributes {dimension_semantics = [], scalar_prefetch = 0 : i64, scratch_operands = 0 : i64, tpu.core_type = #tpu.core_type<tc>} {
    %c0 = arith.constant 0 : index
    %c0_0 = arith.constant 0 : index
    %0 = vector.load %arg0[%c0, %c0_0] : memref<21x24xf32, #tpu.memory_space<vmem>>, vector<20x24xf32>
    %c20 = arith.constant 20 : index
    %c0_1 = arith.constant 0 : index
    %1 = vector.load %arg0[%c20, %c0_1] : memref<21x24xf32, #tpu.memory_space<vmem>>, vector<1x12xf32>
    %c0_2 = arith.constant 0 : index
    %c0_3 = arith.constant 0 : index
    %2 = vector.load %arg1[%c0_2, %c0_3] : memref<165x128xf32, #tpu.memory_space<vmem>>, vector<32x24xf32>
    %c32 = arith.constant 32 : index
    %c0_4 = arith.constant 0 : index
    %3 = vector.load %arg1[%c32, %c0_4] : memref<165x128xf32, #tpu.memory_space<vmem>>, vector<128x32xf32>
    %c160 = arith.constant 160 : index
    %c0_5 = arith.constant 0 : index
    %4 = vector.load %arg1[%c160, %c0_5] : memref<165x128xf32, #tpu.memory_space<vmem>>, vector<1x32xf32>
    %c161 = arith.constant 161 : index
    %c0_6 = arith.constant 0 : index
    %5 = vector.load %arg1[%c161, %c0_6] : memref<165x128xf32, #tpu.memory_space<vmem>>, vector<1x32xf32>
    %c162 = arith.constant 162 : index
    %c0_7 = arith.constant 0 : index
    %6 = vector.load %arg1[%c162, %c0_7] : memref<165x128xf32, #tpu.memory_space<vmem>>, vector<1x32xf32>
    %c163 = arith.constant 163 : index
    %c0_8 = arith.constant 0 : index
    %7 = vector.load %arg1[%c163, %c0_8] : memref<165x128xf32, #tpu.memory_space<vmem>>, vector<1x32xf32>
    %c164 = arith.constant 164 : index
    %c0_9 = arith.constant 0 : index
    %8 = vector.load %arg1[%c164, %c0_9] : memref<165x128xf32, #tpu.memory_space<vmem>>, vector<1x128xf32>
    %cst = arith.constant dense<0.000000e+00> : vector<20x32xf32>
    %9 = tpu.matmul %0, %2, %cst {dimension_numbers = #tpu.dot_dimension_numbers<[1], [1], [0], [0], [0, 0, 1, 0], [], []>} : vector<20x24xf32>, vector<32x24xf32>, vector<20x32xf32> -> vector<20x32xf32>
    %10 = vector.extract_strided_slice %9 {offsets = [0, 0], sizes = [8, 32], strides = [1, 1]} : vector<20x32xf32> to vector<8x32xf32>
    %11 = vector.broadcast %4 : vector<1x32xf32> to vector<8x32xf32>
    %12 = arith.addf %10, %11 : vector<8x32xf32>
    %13 = vector.extract_strided_slice %9 {offsets = [8, 0], sizes = [12, 32], strides = [1, 1]} : vector<20x32xf32> to vector<12x32xf32>
    %14 = vector.broadcast %5 : vector<1x32xf32> to vector<12x32xf32>
    %15 = arith.addf %13, %14 : vector<12x32xf32>
    %16 = arith.fptosi %1 : vector<1x12xf32> to vector<1x12xi32>
    %17 = tpu.iota {dimensions = array<i32: 0>} : vector<8x12xi32>
    %18 = vector.broadcast %16 : vector<1x12xi32> to vector<8x12xi32>
    %19 = arith.cmpi eq, %17, %18 : vector<8x12xi32>
    %cst_10 = arith.constant 4.500000e-01 : f32
    %cst_11 = arith.constant 0.000000e+00 : f32
    %20 = vector.broadcast %cst_10 : f32 to vector<8x12xf32>
    %21 = vector.broadcast %cst_11 : f32 to vector<8x12xf32>
    %22 = arith.select %19, %20, %21 : vector<8x12xi1>, vector<8x12xf32>
    %cst_12 = arith.constant dense<0.000000e+00> : vector<8x32xf32>
    %23 = tpu.matmul %22, %15, %cst_12 {dimension_numbers = #tpu.dot_dimension_numbers<[1], [0], [0], [1], [0, 0, 1, 1], [], []>} : vector<8x12xf32>, vector<12x32xf32>, vector<8x32xf32> -> vector<8x32xf32>
    %24 = arith.addf %12, %23 : vector<8x32xf32>
    %cst_13 = arith.constant dense<0.000000e+00> : vector<8xf32>
    %25 = vector.multi_reduction <add>, %24, %cst_13 [1] : vector<8x32xf32> to vector<8xf32>
    %26 = vector.shape_cast %25 : vector<8xf32> to vector<8x1xf32>
    %27 = vector.shape_cast %26 : vector<8x1xf32> to vector<8x1xf32>
    %28 = vector.broadcast %27 : vector<8x1xf32> to vector<8x32xf32>
    %cst_14 = arith.constant dense<0.000000e+00> : vector<12x32xf32>
    %29 = tpu.matmul %22, %28, %cst_14 {dimension_numbers = #tpu.dot_dimension_numbers<[0], [0], [1], [1], [0, 1, 1, 1], [], []>} : vector<8x12xf32>, vector<8x32xf32>, vector<12x32xf32> -> vector<12x32xf32>
    %30 = arith.addf %15, %29 : vector<12x32xf32>
    %31 = arith.mulf %24, %24 : vector<8x32xf32>
    %cst_15 = arith.constant dense<0.000000e+00> : vector<8xf32>
    %32 = vector.multi_reduction <add>, %31, %cst_15 [1] : vector<8x32xf32> to vector<8xf32>
    %33 = vector.shape_cast %32 : vector<8xf32> to vector<8x1xf32>
    %34 = math.rsqrt %33 : vector<8x1xf32>
    %35 = vector.broadcast %34 : vector<8x1xf32> to vector<8x32xf32>
    %36 = arith.mulf %24, %35 : vector<8x32xf32>
    %cst_16 = arith.constant dense<0.000000e+00> : vector<8x8xf32>
    %37 = tpu.matmul %36, %36, %cst_16 {dimension_numbers = #tpu.dot_dimension_numbers<[1], [1], [0], [0], [0, 0, 1, 0], [], []>} : vector<8x32xf32>, vector<8x32xf32>, vector<8x8xf32> -> vector<8x8xf32>
    %38 = tpu.iota {dimensions = array<i32: 0>} : vector<8x8xi32>
    %39 = tpu.iota {dimensions = array<i32: 1>} : vector<8x8xi32>
    %40 = arith.cmpi eq, %38, %39 : vector<8x8xi32>
    %41 = arith.extui %40 : vector<8x8xi1> to vector<8x8xi32>
    %42 = arith.sitofp %41 : vector<8x8xi32> to vector<8x8xf32>
    %43 = arith.subf %37, %42 : vector<8x8xf32>
    %44 = math.exp %43 : vector<8x8xf32>
    %cst_17 = arith.constant dense<0.000000e+00> : vector<8xf32>
    %45 = vector.multi_reduction <add>, %44, %cst_17 [1] : vector<8x8xf32> to vector<8xf32>
    %46 = vector.shape_cast %45 : vector<8xf32> to vector<8x1xf32>
    %47 = tpu.reciprocal %46 : vector<8x1xf32> -> vector<8x1xf32>
    %48 = vector.broadcast %47 : vector<8x1xf32> to vector<8x8xf32>
    %49 = arith.mulf %44, %48 : vector<8x8xf32>
    %cst_18 = arith.constant dense<0.000000e+00> : vector<8x32xf32>
    %50 = tpu.matmul %49, %24, %cst_18 {dimension_numbers = #tpu.dot_dimension_numbers<[1], [0], [0], [1], [0, 0, 1, 1], [], []>} : vector<8x8xf32>, vector<8x32xf32>, vector<8x32xf32> -> vector<8x32xf32>
    %cst_19 = arith.constant dense<0.000000e+00> : vector<32xf32>
    %51 = vector.multi_reduction <add>, %30, %cst_19 [0] : vector<12x32xf32> to vector<32xf32>
    %52 = vector.shape_cast %51 : vector<32xf32> to vector<1x32xf32>
    %cst_20 = arith.constant 1.200000e+01 : f32
    %53 = vector.broadcast %cst_20 : f32 to vector<1x32xf32>
    %54 = arith.divf %52, %53 : vector<1x32xf32>
    %55 = vector.broadcast %54 : vector<1x32xf32> to vector<12x32xf32>
    %56 = arith.subf %30, %55 : vector<12x32xf32>
    %57 = arith.mulf %56, %56 : vector<12x32xf32>
    %cst_21 = arith.constant dense<0.000000e+00> : vector<32xf32>
    %58 = vector.multi_reduction <add>, %57, %cst_21 [0] : vector<12x32xf32> to vector<32xf32>
    %59 = vector.shape_cast %58 : vector<32xf32> to vector<1x32xf32>
    %cst_22 = arith.constant 1.200000e+01 : f32
    %60 = vector.broadcast %cst_22 : f32 to vector<1x32xf32>
    %61 = arith.divf %59, %60 : vector<1x32xf32>
    %62 = vector.broadcast %54 : vector<1x32xf32> to vector<12x32xf32>
    %63 = arith.subf %30, %62 : vector<12x32xf32>
    %cst_23 = arith.constant 9.99999974E-6 : f32
    %64 = vector.broadcast %cst_23 : f32 to vector<1x32xf32>
    %65 = arith.addf %61, %64 : vector<1x32xf32>
    %66 = math.rsqrt %65 : vector<1x32xf32>
    %67 = vector.broadcast %66 : vector<1x32xf32> to vector<12x32xf32>
    %68 = arith.mulf %63, %67 : vector<12x32xf32>
    %69 = vector.broadcast %6 : vector<1x32xf32> to vector<12x32xf32>
    %70 = arith.mulf %68, %69 : vector<12x32xf32>
    %71 = vector.broadcast %7 : vector<1x32xf32> to vector<12x32xf32>
    %72 = arith.addf %70, %71 : vector<12x32xf32>
    %73 = tpu.concatenate %50, %72 in 0 : vector<8x32xf32>, vector<12x32xf32> -> vector<20x32xf32>
    %cst_24 = arith.constant dense<0.000000e+00> : vector<20x128xf32>
    %74 = tpu.matmul %73, %3, %cst_24 {dimension_numbers = #tpu.dot_dimension_numbers<[1], [1], [0], [0], [0, 0, 1, 0], [], []>} : vector<20x32xf32>, vector<128x32xf32>, vector<20x128xf32> -> vector<20x128xf32>
    %75 = vector.broadcast %8 : vector<1x128xf32> to vector<20x128xf32>
    %76 = arith.addf %74, %75 : vector<20x128xf32>
    %c0_25 = arith.constant 0 : index
    %c0_26 = arith.constant 0 : index
    %77 = vector.load %arg2[%c0_25, %c0_26] : memref<20x128xf32, #tpu.memory_space<vmem>>, vector<20x128xf32>
    tpu.vector_store %arg2[%c0_25, %c0_26], %76 {strides = array<i32>} : memref<20x128xf32, #tpu.memory_space<vmem>>, vector<20x128xf32>,
    return
  }
}

</mosaic_0001>

<bundles_post_ra>
// kernel: tpu_custom_call.1
= control target key start
LH: loop header
LB: loop body
LE: loop exit
PB: predicated region body
PF: predicated region fallthrough
CT: control target
= control target key end

     0   :  { %7 = vsyncpa [#allocation3], 0  ;;  %s1196_s0 = inlined_call_operand.hbm [shape: f32[21,24], index: 0, kind: input, shape index: {}]   ;;  %s1197_s1 = inlined_call_operand.hbm [shape: f32[165,128], index: 1, kind: input, shape index: {}]   ;;  %s1198_s2 = inlined_call_operand.hbm [shape: f32[20,128], index: 2, kind: output, shape index: {}]  }
   0x1   :  { %8 = vsyncpa [#allocation6], 0 }
   0x2   :  { %9 = vsyncpa [#allocation4], 0  ;;  %s1052_s9 = smov [#allocation2]   ;;  %s980_s13 = scalar_lea.hbm %s1196_s0, 384 }
   0x3   :  { %s15_s10 = sshll.u32 %s1052_s9, 4  ;;  %p981_p0 = scmp.ne.s32.totalorder %s1196_s0, %s980_s13  ;;  %s16_s10 = int_to_ptr.vmem [resolvable:$true] %s15_s10 }
   0x4   :  { %p984_p1 = scmp.lt.u32.totalorder %s980_s13, %s1196_s0 }
   0x6   :  { %p986_p2 = pnand %p984_p1, %p981_p0 }
   0x8   :  { %989 = shalt.err (!%p986_p2)
}
   0x9   :  { %s990_s18 = scalar_lea.vmem %s16_s10, 384  ;;  %p995_p4 = scmp.lt.s32.totalorder %s16_s10, %s16_s10 }
   0xa   :  { %p991_p3 = scmp.ne.s32.totalorder %s16_s10, %s990_s18  ;;  %p996_p5 = scmp.lt.s32.totalorder %s990_s18, %s990_s18 }
   0xc   :  { %p997_p6 = por %p996_p5, %p995_p4 }
   0xe   :  { %p998_p7 = pnand %p997_p6, %p991_p3 }
  0x10   :  { %1001 = shalt.err (!%p998_p7)
}
  0x11   :  { %s1053_s19 = smov 128   ;;  %s1054_s20 = smov 8  }
  0x12   :  { %21 = dma.hbm_to_vmem [thread:$0]  %s1196_s0, 384, %s16_s10, [#allocation3], %s1053_s19, %s1053_s19, %s1054_s20  }
  0x13   :  { %s1055_s23 = smov [#allocation5]   ;;  %s1002_s27 = scalar_lea.hbm %s1197_s1, 2688 }
  0x14   :  { %s27_s24 = sshll.u32 %s1055_s23, 4  ;;  %p1003_p8 = scmp.ne.s32.totalorder %s1197_s1, %s1002_s27  ;;  %s28_s24 = int_to_ptr.vmem [resolvable:$true] %s27_s24 }
  0x15   :  { %p1006_p9 = scmp.lt.u32.totalorder %s1002_s27, %s1197_s1 }
  0x17   :  { %p1008_p10 = pnand %p1006_p9, %p1003_p8 }
  0x19   :  { %1011 = shalt.err (!%p1008_p10)
}
  0x1a   :  { %s1012_s4 = scalar_lea.vmem %s28_s24, 2688  ;;  %p1017_p12 = scmp.lt.s32.totalorder %s28_s24, %s28_s24 }
  0x1b   :  { %p1013_p11 = scmp.ne.s32.totalorder %s28_s24, %s1012_s4  ;;  %p1018_p13 = scmp.lt.s32.totalorder %s1012_s4, %s1012_s4 }
  0x1d   :  { %p1019_p0 = por %p1018_p13, %p1017_p12 }
  0x1f   :  { %p1020_p1 = pnand %p1019_p0, %p1013_p11 }
  0x21   :  { %1023 = shalt.err (!%p1020_p1)
}
  0x22   :  { %33 = dma.hbm_to_vmem [thread:$0]  %s1197_s1, 2688, %s28_s24, [#allocation6], %s1053_s19, %s1053_s19, %s1054_s20  }
  0x23   :  { %1046 = dma.done.wait [#allocation3], 384  }
  0x24   :  { %1047 = vsyncadd [#allocation3], 4294966912 }
  0x25   :  { %1048 = dma.done.wait [#allocation6], 2688  }
  0x26   :  { %1049 = vsyncadd [#allocation6], 4294964608  ;;  %v1056_v0 = vmov 0.0|0.0   ;;  %vm1057_vm0 = vmmov 0   ;;  %v1058_v1 = vmov 0.0   ;;  %vm69_vm1 = vcmask 195584  }
  0x27   :  { %914 = vmatprep.subr.bf16.mxu0 %v1056_v0  ;;  %842 = vmatprep.mubr.msk.f32.mxu0 %vm1057_vm0, %v1058_v1  ;;  %v44_v2 = vld [vmem:[#allocation5] sm:$0xff]  ;;  %v45_v3 = vld [vmem:[#allocation5 + $0x8] sm:$0xff]  ;;  %vm916_vm2 = vmpackc.low %vm69_vm1, %vm69_vm1  ;;  %v183_v11 = vlaneseq  ;;  %vm195_vm4 = vcmask 1043456   ;;  %vm1059_vm5 = vmmov 1   ;;  %vm191_vm7 = vcmask 97280   ;;  %s1060_s1 = smov [#allocation7]  }
  0x28   :  { %926 = vmatprep.subr.bf16.mxu1 %v1056_v0  ;;  %905 = vmatprep.mubr.msk.f32.mxu1 %vm1057_vm0, %v1058_v1  ;;  %v915_v4 = vpack.c.bf16 %v45_v3, %v44_v2  ;;  %v46_v5 = vld [vmem:[#allocation5 + $0x10] sm:$0xff]  ;;  %v47_v6 = vld [vmem:[#allocation5 + $0x18] sm:$0xff]  ;;  %v40_v8 = vld [vmem:[#allocation2] sm:$0xff]  ;;  %vm270_vm8 = vcmask 261120   ;;  %vm306_vm9 = vcmask 64512   ;;  %vm556_vm10 = vcmask 257024  }
  0x29   :  { %v919_v7 = vpack.c.bf16 %v47_v6, %v46_v5  ;;  %v41_v9 = vld [vmem:[#allocation2 + $0x8] sm:$0xff]  ;;  %v42_v10 = vld [vmem:[#allocation2 + $0x10] sm:$0xf]  ;;  %v43_v12 = vld [vmem:[#allocation2 + $0x14] sm:$0x1]  ;;  %v184_v14 = vshrl.u32 %v183_v11, 7 }
  0x2a   :  { %917 = vmatpush3.bf16.xpose.msk.msra.mxu0 %vm916_vm2, %v915_v4  ;;  %v961_v13 = vtrunc.f32 %v43_v12  ;;  %v767_v21 = vld [vmem:[#allocation5 + $0xa1] ss:$0 sm:$0xff]  ;;  %vm924_vm6 = vmpackc.low %vm195_vm4, %vm1059_vm5  ;;  %v766_v27 = vld [vmem:[#allocation5 + $0xa0] ss:$0 sm:$0xff]  ;;  %v470_v43 = vand.u32 127, %v183_v11  ;;  %s746_s6 = sshll.u32 %s1060_s1, 4  ;;  %s747_s6 = int_to_ptr.vmem [resolvable:$true] %s746_s6 }
  0x2b   :  { %918 = vmatprep.subr.bf16.mxu0 %v1056_v0  ;;  %v187_v16 = vsub.s32 0, %v184_v14  ;;  %vm1146_vm12 = vmpackc.low %vm270_vm8, %vm270_vm8  ;;  %s1024_s7 = scalar_lea.vmem %s747_s6, 384  ;;  %p1029_p3 = scmp.lt.s32.totalorder %s747_s6, %s747_s6 }
  0x2c   :  { %v962_v15 = vcvt.f32.s32 %v961_v13  ;;  %vm471_vm11 = vcmp.eq.s32.totalorder %v184_v14, %v470_v43  ;;  %p1025_p2 = scmp.ne.s32.totalorder %s747_s6, %s1024_s7  ;;  %p1030_p4 = scmp.lt.s32.totalorder %s1024_s7, %s1024_s7 }
  0x2d   :  { %v774_v49 = vsel %vm471_vm11, 1.0, %v1058_v1 }
  0x2e   :  { %v188_v17 = vrot.slane %v962_v15, %v187_v16  ;;  %v48_v16 = vld [vmem:[#allocation5 + $0x20] sm:$0xff]  ;;  %p1031_p5 = por %p1030_p4, %p1029_p3 }
  0x30   :  { %vm189_vm3 = vcmp.eq.s32.totalorder %v184_v14, %v188_v17  ;;  %v49_v17 = vld [vmem:[#allocation5 + $0x28] sm:$0xff]  ;;  %p1032_p6 = pnand %p1031_p5, %p1025_p2 }
  0x31   :  { %v190_v18 = vsel %vm189_vm3, 0.45, %v1058_v1 }
  0x32   :  { %921 = vmatpush3.bf16.xpose.msk.msra.mxu0 %vm916_vm2, %v919_v7  ;;  %274 = vxpose.xlu1.b32.start.end [1/1] (short) (narrow) %v190_v18, 16 }
  0x33   :  { %922 = vmatprep.subr.bf16.mxu0 %v1056_v0 }
  0x39   :  { %843 = vmatmul.mubr.msk.f32.vlgmr.msra.gmra.mrb[0].mxu0 %vm69_vm1, %v40_v8 }
  0x3a   :  { %845 = vmatprep.mubr.msk.f32.mxu0 %vm1057_vm0, %v1058_v1 }
  0x3d   :  { %846 = vmatmul.mubr.msk.f32.gmra.mrb[2].mxu0 %vm69_vm1, %v41_v9 }
  0x3e   :  { %848 = vmatprep.mubr.msk.f32.mxu0 %vm1057_vm0, %v1058_v1 }
  0x41   :  { %849 = vmatmul.mubr.msk.f32.gmra.mrb[4].mxu0 %vm69_vm1, %v42_v10 }
  0x42   :  { %855 = vmatprep.mubr.msk.f32.mxu0 %vm1057_vm0, %v1058_v1 }
  0xb2   :  { %v290_v34 = vpop.trf.xlu1 }
  0xb6   :  { %v291_v37 = vpop.trf.xlu1 }
 0x110   :  { %v162_v19 = vpop.f32.mrb[2].mxu0 }
 0x111   :  { %v847_v20 = vpop.f32.mrb[3].mxu0  ;;  %v180_v23 = vadd.f32 %v767_v21, %v162_v19 }
 0x114   :  { %v167_v22 = vpop.f32.mrb[4].mxu0 }
 0x115   :  { %v181_v24 = vadd.f32 %v767_v21, %v167_v22  ;;  %v850_v25 = vpop.f32.mrb[5].mxu0  ;;  %v927_v21 = vpack.c.bf16 %v49_v17, %v48_v16  ;;  %v50_v22 = vld [vmem:[#allocation5 + $0x30] sm:$0xff] }
 0x116   :  { %v52_v25 = vld [vmem:[#allocation5 + $0x40] sm:$0xff] }
 0x117   :  { %v923_v26 = vpack.c.bf16 %v181_v24, %v180_v23  ;;  %929 = vmatpush3.bf16.xpose.msk.msra.mxu1 %vm1146_vm12, %v927_v21 }
 0x118   :  { %930 = vmatprep.subr.bf16.mxu1 %v1056_v0 }
 0x119   :  { %925 = vmatpush3.bf16.msk.msra.mxu0 %vm924_vm6, %v923_v26  ;;  %v53_v26 = vld [vmem:[#allocation5 + $0x48] sm:$0xff] }
 0x11c   :  { %856 = vmatmul.mubr.msk.f32.vlgmr.msra.gmra.mrb[0].mxu0 %vm191_vm7, %v190_v18 }
 0x11d   :  { %860 = vmatprep.mubr.msk.f32.mxu0 %vm306_vm9, %v290_v34  ;;  %v58_v34 = vld [vmem:[#allocation5 + $0x70] sm:$0xff] }
 0x1ef   :  { %v265_v28 = vpop.f32.mrb[0].mxu0 }
 0x1f0   :  { %v958_v29 = vadd.f32 %v766_v27, %v265_v28  ;;  %v857_v30 = vpop.f32.mrb[1].mxu0  ;;  %v935_v27 = vpack.c.bf16 %v53_v26, %v52_v25  ;;  %v54_v28 = vld [vmem:[#allocation5 + $0x50] sm:$0xff] }
 0x1f2   :  { %v390_v31 = vmul.f32 %v958_v29, %v958_v29  ;;  %v271_v33 = vsel %vm270_vm8, %v958_v29, 0.0 }
 0x1f4   :  { %v391_v32 = vsel %vm270_vm8, %v390_v31, 0.0  ;;  %v56_v31 = vld [vmem:[#allocation5 + $0x60] sm:$0xff] }
 0x1f5   :  { %392 = vadd.xlane.f32.xlu0 %v391_v32  ;;  %v57_v32 = vld [vmem:[#allocation5 + $0x68] sm:$0xff] }
 0x1f9   :  { %272 = vadd.xlane.f32.xlu0 %v271_v33  ;;  %v943_v33 = vpack.c.bf16 %v57_v32, %v56_v31 }
 0x282   :  { %v393_v35 = vpop.xlane.xlu0 %392 }
 0x283   :  { %972 = vrsqrt.f32 %v393_v35  ;;  %v59_v35 = vld [vmem:[#allocation5 + $0x78] sm:$0xff] }
 0x286   :  { %v273_v36 = vpop.xlane.xlu0 %272 }
 0x287   :  { %858 = vmatprep.subr.mxu0 %v273_v36 }
 0x288   :  { %859 = vmatpush3.msra.mxu0 %v273_v36  ;;  %v947_v36 = vpack.c.bf16 %v59_v35, %v58_v34 }
 0x289   :  { %861 = vmatmul.mubr.msk.f32.vlgmr.msra.gmra.mrb[6].mxu0 %vm306_vm9, %v291_v37  ;;  %863 = vmatprep.subr.mxu0 %v1058_v1  ;;  %v60_v37 = vld [vmem:[#allocation5 + $0x80] sm:$0xff] }
 0x28a   :  { %865 = vmatprep.mubr.msk.f32.mxu0 %vm1057_vm0, %v1058_v1 }
 0x28d   :  { %v973_v38 = vpop.eup %972 }
 0x28e   :  { %v395_v39 = vmul.f32 %v973_v38, %v958_v29  ;;  %v61_v38 = vld [vmem:[#allocation5 + $0x88] sm:$0xff] }
 0x290   :  { %864 = vmatpush3.xpose.msk.msra.mxu0 %vm270_vm8, %v395_v39 }
 0x291   :  { %868 = vmatprep.subr.mxu0 %v1058_v1 }
 0x293   :  { %866 = vmatmul.mubr.msk.f32.vlgmr.msra.gmra.mrb[8].mxu0 %vm270_vm8, %v395_v39  ;;  %v951_v39 = vpack.c.bf16 %v61_v38, %v60_v37 }
 0x294   :  { %869 = vmatpush3.msra.mxu0 %v958_v29  ;;  %870 = vmatprep.mubr.msk.f32.mxu0 %vm1057_vm0, %v1058_v1  ;;  %v55_v29 = vld [vmem:[#allocation5 + $0x58] sm:$0xff] }
 0x295   :  { %v939_v30 = vpack.c.bf16 %v55_v29, %v54_v28 }
 0x35c   :  { %v862_v40 = vpop.f32.mrb[6].mxu0 }
 0x35d   :  { %v389_v41 = vadd.f32 %v862_v40, %v181_v24  ;;  %v379_v42 = vpop.f32.mrb[7].mxu0  ;;  %v62_v40 = vld [vmem:[#allocation5 + $0x90] sm:$0xff] }
 0x35e   :  { %v388_v44 = vadd.f32 %v379_v42, %v180_v23  ;;  %v51_v23 = vld [vmem:[#allocation5 + $0x38] sm:$0xff] }
 0x35f   :  { %v557_v45 = vsel %vm556_vm10, %v389_v41, 0.0  ;;  %v931_v24 = vpack.c.bf16 %v51_v23, %v50_v22 }
 0x360   :  { %v555_v46 = vsel %vm270_vm8, %v388_v44, 0.0 }
 0x361   :  { %v558_v47 = vadd.f32 %v557_v45, %v555_v46  ;;  %933 = vmatpush3.bf16.xpose.msk.msra.mxu1 %vm1146_vm12, %v931_v24  ;;  %v776_v46 = vld [vmem:[#allocation5 + $0xa2] ss:$0 sm:$0xff] }
 0x362   :  { %934 = vmatprep.subr.bf16.mxu1 %v1056_v0 }
 0x363   :  { %v559_v48 = vrot.slane %v558_v47, 4 }
 0x365   :  { %v560_v50 = vadd.f32 %v559_v48, %v558_v47 }
 0x366   :  { %v465_v51 = vpop.f32.mrb[8].mxu0 }
 0x367   :  { %v561_v52 = vrot.slane %v560_v50, 2  ;;  %v474_v53 = vsub.f32 %v465_v51, %v774_v49  ;;  %v867_v54 = vpop.f32.mrb[9].mxu0  ;;  %v777_v49 = vld [vmem:[#allocation5 + $0xa3] ss:$0 sm:$0xff] }
 0x369   :  { %v562_v55 = vadd.f32 %v561_v52, %v560_v50  ;;  %v475_v56 = vmul.f32 1.442695, %v474_v53  ;;  %937 = vmatpush3.bf16.xpose.msk.msra.mxu1 %vm1146_vm12, %v935_v27  ;;  %v778_v53 = vld [vmem:[#allocation5 + $0xa4] ss:$0 sm:$0xff] }
 0x36a   :  { %938 = vmatprep.subr.bf16.mxu1 %v1056_v0 }
 0x36b   :  { %v563_v57 = vrot.slane %v562_v55, 1  ;;  %974 = vpow2.f32 %v475_v56 }
 0x36d   :  { %v564_v58 = vadd.f32 %v563_v57, %v562_v55 }
 0x36f   :  { %v566_v59 = vmul.f32 0.083333336, %v564_v58 }
 0x371   :  { %v567_v60 = vsub.f32 %v388_v44, %v566_v59  ;;  %v568_v61 = vsub.f32 %v389_v41, %v566_v59  ;;  %941 = vmatpush3.bf16.xpose.msk.msra.mxu1 %vm1146_vm12, %v939_v30  ;;  %v63_v41 = vld [vmem:[#allocation5 + $0x98] sm:$0xff] }
 0x372   :  { %942 = vmatprep.subr.bf16.mxu1 %v1056_v0  ;;  %v955_v42 = vpack.c.bf16 %v63_v41, %v62_v40 }
 0x373   :  { %v569_v62 = vmul.f32 %v567_v60, %v567_v60  ;;  %v570_v63 = vmul.f32 %v568_v61, %v568_v61 }
 0x375   :  { %v975_v2 = vpop.eup %974  ;;  %v571_v3 = vsel %vm270_vm8, %v569_v62, 0.0  ;;  %v572_v4 = vsel %vm556_vm10, %v570_v63, 0.0 }
 0x376   :  { %v573_v5 = vadd.f32 %v572_v4, %v571_v3  ;;  %v477_v6 = vsel %vm306_vm9, %v975_v2, 0.0 }
 0x377   :  { %478 = vadd.xlane.f32.xlu1 %v477_v6 }
 0x378   :  { %v574_v7 = vrot.slane %v573_v5, 4 }
 0x379   :  { %945 = vmatpush3.bf16.xpose.msk.msra.mxu1 %vm1146_vm12, %v943_v33 }
 0x37a   :  { %v575_v8 = vadd.f32 %v574_v7, %v573_v5  ;;  %946 = vmatprep.subr.bf16.mxu1 %v1056_v0 }
 0x37c   :  { %v576_v9 = vrot.slane %v575_v8, 2 }
 0x37e   :  { %v577_v10 = vadd.f32 %v576_v9, %v575_v8 }
 0x380   :  { %v578_v11 = vrot.slane %v577_v10, 1 }
 0x381   :  { %949 = vmatpush3.bf16.xpose.msk.msra.mxu1 %vm1146_vm12, %v947_v36 }
 0x382   :  { %v579_v12 = vadd.f32 %v578_v11, %v577_v10  ;;  %950 = vmatprep.subr.bf16.mxu1 %v1056_v0 }
 0x384   :  { %v580_v13 = vmul.f32 0.083333336, %v579_v12 }
 0x386   :  { %v581_v14 = vadd.f32 1e-05, %v580_v13 }
 0x388   :  { %976 = vrsqrt.f32 %v581_v14 }
 0x389   :  { %953 = vmatpush3.bf16.xpose.msk.msra.mxu1 %vm1146_vm12, %v951_v39 }
 0x38a   :  { %954 = vmatprep.subr.bf16.mxu1 %v1056_v0 }
 0x391   :  { %957 = vmatpush3.bf16.xpose.msk.msra.mxu1 %vm1146_vm12, %v955_v42 }
 0x392   :  { %v977_v15 = vpop.eup %976 }
 0x393   :  { %v583_v19 = vmul.f32 %v977_v15, %v567_v60  ;;  %v584_v20 = vmul.f32 %v977_v15, %v568_v61 }
 0x395   :  { %v589_v47 = vmul.f32 %v776_v46, %v583_v19  ;;  %v590_v0 = vmul.f32 %v776_v46, %v584_v20 }
 0x397   :  { %v595_v51 = vadd.f32 %v777_v49, %v589_v47  ;;  %v596_v52 = vadd.f32 %v777_v49, %v590_v0 }
 0x404   :  { %v479_v43 = vpop.xlane.xlu1 %478 }
 0x405   :  { %978 = vrcp.f32 %v479_v43 }
 0x40f   :  { %v979_v44 = vpop.eup %978 }
 0x410   :  { %v481_v45 = vmul.f32 %v979_v44, %v975_v2 }
 0x412   :  { %871 = vmatmul.mubr.msk.f32.vlgmr.msra.gmra.mrb[10].mxu0 %vm306_vm9, %v481_v45 }
 0x4e5   :  { %v551_v48 = vpop.f32.mrb[10].mxu0 }
 0x4e6   :  { %v872_v50 = vpop.f32.mrb[11].mxu0  ;;  %906 = vmatmul.mubr.msk.f32.vlgmr.msra.gmra.mrb[0].mxu1 %vm270_vm8, %v551_v48 }
 0x4e7   :  { %908 = vmatprep.mubr.msk.f32.mxu1 %vm1057_vm0, %v1058_v1 }
 0x4ea   :  { %909 = vmatmul.mubr.msk.f32.gmra.mrb[2].mxu1 %vm270_vm8, %v595_v51 }
 0x4eb   :  { %911 = vmatprep.mubr.msk.f32.mxu1 %vm1057_vm0, %v1058_v1 }
 0x4ee   :  { %912 = vmatmul.mubr.msk.f32.gmra.mrb[4].mxu1 %vm270_vm8, %v596_v52 }
 0x5b9   :  { %v724_v54 = vpop.f32.mrb[0].mxu1 }
 0x5ba   :  { %v725_v55 = vadd.f32 %v778_v53, %v724_v54  ;;  %v907_v56 = vpop.f32.mrb[1].mxu1 }
 0x5bc   :  { %738 = vst [vmem:[#allocation7] sm:$0xff] %v725_v55 }
 0x5bd   :  { %v729_v57 = vpop.f32.mrb[2].mxu1 }
 0x5be   :  { %v730_v58 = vadd.f32 %v778_v53, %v729_v57  ;;  %v910_v59 = vpop.f32.mrb[3].mxu1 }
 0x5c0   :  { %739 = vst [vmem:[#allocation7 + $0x8] sm:$0xff] %v730_v58 }
 0x5c1   :  { %v734_v60 = vpop.f32.mrb[4].mxu1 }
 0x5c2   :  { %v735_v61 = vadd.f32 %v778_v53, %v734_v60  ;;  %v913_v62 = vpop.f32.mrb[5].mxu1 }
 0x5c4   :  { %740 = vst [vmem:[#allocation7 + $0x10] sm:$0xf] %v735_v61 }
 0x5c5   :  { %1035 = shalt.err (!%p1032_p6)
}
 0x5c6   :  { %s1036_s10 = scalar_lea.hbm %s1198_s2, 384 }
 0x5c7   :  { %p1037_p7 = scmp.ne.s32.totalorder %s1198_s2, %s1036_s10  ;;  %p1040_p8 = scmp.lt.u32.totalorder %s1036_s10, %s1198_s2 }
 0x5c9   :  { %p1042_p9 = pnand %p1040_p8, %p1037_p7 }
 0x5cb   :  { %1045 = shalt.err (!%p1042_p9)
}
 0x5cc   :  { %752 = dma.vmem_to_hbm [thread:$0]  %s747_s6, 384, %s1198_s2, [#allocation4], %s1053_s19, %s1053_s19, %s1054_s20  }
 0x5cd   :  { %1050 = dma.done.wait [#allocation4], 384  }
 0x5ce   :  { %1051 = vsyncadd [#allocation4], 4294966912 }
 0x5cf   :  { %756 = vsyncpa [#allocation3], 1 }
 0x5d0   :  { %757 = vsyncpa [#allocation6], 1 }
 0x5d1   :  { %758 = vsyncpa [#allocation4], 1 }

</bundles_post_ra>
